<compile_context>
chip_gen: v7x
topology: tpu7x:2x2x1
jax: 0.10.0
libtpu: 0.0.40
codegen_flags: <defaults>
</compile_context>

<pallas_src>
import functools
import math

import jax
import jax.numpy as jnp
from jax import lax
from jax.experimental import pallas as pl
from jax.experimental.pallas import tpu as pltpu


def _pair(v):
    return tuple(v) if isinstance(v, (tuple, list)) else (v, v)


def _round_up(x, m):
    return ((x + m - 1) // m) * m


# ---------------------------------------------------------------------------
# Pallas kernel: tiled im2col matmul, f32 accumulator over the CKK axis,
# weight fully resident in VMEM, bias fused into the final store.
#   grid = (N, OUTP_pad // TO, CKK_pad // TK)
#   semantics = ("parallel", "parallel", "arbitrary")
# ---------------------------------------------------------------------------
def _deform_matmul_kernel(w_ref, col_ref, b_ref, o_ref, acc_ref, *, tk, nk):
    k = pl.program_id(2)

    @pl.when(k == 0)
    def _():
        acc_ref[...] = jnp.zeros_like(acc_ref)

    if nk == 1:
        w = w_ref[...]                                   # static full view
    else:
        start = pl.multiple_of(k * tk, tk)               # tk % 128 == 0 here
        w = w_ref[:, pl.ds(start, tk)]

    # (C_out, TK) @ (TK, TO) on the MXU, bf16 inputs, f32 accumulation.
    acc_ref[...] += jnp.dot(w, col_ref[...],
                            preferred_element_type=jnp.float32)

    @pl.when(k == nk - 1)
    def _():
        o_ref[...] = (acc_ref[...] + b_ref[...]).astype(o_ref.dtype)


# ---------------------------------------------------------------------------
# Forward wrapper (glue: offset decoding, bilinear gather+blend, tiling, call)
# ---------------------------------------------------------------------------
def deform_conv_forward(x, offset, weight, bias=None, stride=(1, 1),
                        padding=(0, 0), dilation=(1, 1), groups=1,
                        deformable_groups=1, *,
                        outp_tile_cap=1024, k_tile_cap=512):
    x = x.astype(jnp.float32)
    offset = offset.astype(jnp.float32)
    weight = weight.astype(jnp.float32)

    N, C, H, W = x.shape
    C_out, _C_per_g, kH, kW = weight.shape
    sh, sw = stride
    ph, pw = padding
    dh, dw = dilation
    # TODO(synk): groups > 1 (grouped deformable conv) not implemented.
    assert groups == 1, "only groups=1 implemented"
    DG = deformable_groups
    assert C % DG == 0

    H_out = (H + 2 * ph - (dh * (kH - 1) + 1)) // sh + 1
    W_out = (W + 2 * pw - (dw * (kW - 1) + 1)) // sw + 1
    KK = kH * kW
    OUTP = H_out * W_out
    CKK = C * KK
    rep = C // DG

    # Offset layout (matches the CUDA kernel): (N, DG*2*KK, Ho, Wo), where
    # within a deformable group channel 2*kk is the y-offset and 2*kk+1 the
    # x-offset for kernel tap kk.
    off = offset.reshape(N, DG, KK, 2, H_out, W_out)
    off_y = off[:, :, :, 0]                       # (N, DG, KK, Ho, Wo)
    off_x = off[:, :, :, 1]

    ky = jnp.repeat(jnp.arange(kH), kW)           # (KK,)
    kx = jnp.tile(jnp.arange(kW), kH)             # (KK,)
    ho = jnp.arange(H_out)
    wo = jnp.arange(W_out)
    p_y = (ky[:, None, None] * dh + ho[None, :, None] * sh - ph).astype(jnp.float32)
    p_x = (kx[:, None, None] * dw + wo[None, None, :] * sw - pw).astype(jnp.float32)

    samp_y = p_y[None, None] + off_y              # (N, DG, KK, Ho, Wo)
    samp_x = p_x[None, None] + off_x

    h_low = jnp.floor(samp_y)
    w_low = jnp.floor(samp_x)
    lh = samp_y - h_low
    lw = samp_x - w_low
    hh = 1.0 - lh
    hw = 1.0 - lw
    h_low_i = h_low.astype(jnp.int32)
    w_low_i = w_low.astype(jnp.int32)

    # CUDA impl: sample is zero unless (-1 < y < H) and (-1 < x < W)
    valid = (samp_y > -1.0) & (samp_y < H) & (samp_x > -1.0) & (samp_x < W)

    x_g = x.reshape(N, DG, rep, H * W)            # per-deformable-group slices

    # Single blended im2col column (f32 blend, then bf16 for the matmul).
    col = jnp.zeros((N, DG, rep, KK, OUTP), jnp.float32)
    for dy, dx in ((0, 0), (0, 1), (1, 0), (1, 1)):
        hi = h_low_i + dy
        wi = w_low_i + dx
        in_bounds = (hi >= 0) & (hi < H) & (wi >= 0) & (wi < W)
        wy = hh if dy == 0 else lh
        wx = hw if dx == 0 else lw
        bw = jnp.where(valid & in_bounds, wy * wx, 0.0)       # (N,DG,KK,Ho,Wo)
        idx = jnp.clip(hi, 0, H - 1) * W + jnp.clip(wi, 0, W - 1)
        idx = idx.reshape(N, DG, 1, KK * OUTP)
        idx = jnp.broadcast_to(idx, (N, DG, rep, KK * OUTP))  # indices only
        vals = jnp.take_along_axis(x_g, idx, axis=-1)
        vals = vals.reshape(N, DG, rep, KK, OUTP)
        # bilinear weights broadcast over the channel-replica axis (no repeat)
        col = col + vals * bw.reshape(N, DG, 1, KK, OUTP)

    col = col.reshape(N, CKK, OUTP)

    # --- tiling / padding -------------------------------------------------
    TO = min(outp_tile_cap, _round_up(OUTP, 128))   # lane-dense output tile
    OUTP_pad = _round_up(OUTP, TO)
    if CKK <= k_tile_cap:
        TK = CKK
        CKK_pad = CKK
    else:
        TK = k_tile_cap                             # multiple of 128
        CKK_pad = _round_up(CKK, TK)

    w2d = weight.reshape(C_out, CKK)
    if CKK_pad != CKK:
        w2d = jnp.pad(w2d, ((0, 0), (0, CKK_pad - CKK)))
        col = jnp.pad(col, ((0, 0), (0, CKK_pad - CKK), (0, 0)))
    if OUTP_pad != OUTP:
        col = jnp.pad(col, ((0, 0), (0, 0), (0, OUTP_pad - OUTP)))

    col = col.astype(jnp.bfloat16)
    w2d = w2d.astype(jnp.bfloat16)

    if bias is None:
        bias2d = jnp.zeros((C_out, 1), jnp.float32)
    else:
        bias2d = bias.astype(jnp.float32).reshape(C_out, 1)

    n_j = OUTP_pad // TO
    n_k = CKK_pad // TK

    # Weight and bias use a constant block index -> DMA'd into VMEM once and
    # kept resident across the whole grid (no per-step re-streaming).
    w_spec = pl.BlockSpec((C_out, CKK_pad), lambda n, j, k: (0, 0))
    col_spec = pl.BlockSpec((None, TK, TO), lambda n, j, k: (n, k, j))
    b_spec = pl.BlockSpec((C_out, 1), lambda n, j, k: (0, 0))
    out_spec = pl.BlockSpec((None, C_out, TO), lambda n, j, k: (n, 0, j))

    cost = pl.CostEstimate(
        flops=2 * N * C_out * CKK_pad * OUTP_pad,
        transcendentals=0,
        bytes_accessed=(col.size * 2                      # bf16 column, read once
                        + w2d.size * 2                    # weight, read once
                        + C_out * 4                       # bias
                        + N * C_out * OUTP_pad * 4))      # f32 output

    kernel = functools.partial(_deform_matmul_kernel, tk=TK, nk=n_k)

    out = pl.pallas_call(
        kernel,
        out_shape=jax.ShapeDtypeStruct((N, C_out, OUTP_pad), jnp.float32),
        grid=(N, n_j, n_k),
        in_specs=[w_spec, col_spec, b_spec],
        out_specs=out_spec,
        scratch_shapes=[pltpu.VMEM((C_out, TO), jnp.float32)],
        compiler_params=pltpu.CompilerParams(
            dimension_semantics=("parallel", "parallel", "arbitrary"),
            vmem_limit_bytes=48 * 1024 * 1024),
        cost_estimate=cost,
    )(w2d, col, bias2d)

    out = out[:, :, :OUTP].reshape(N, C_out, H_out, W_out)
    return out


# ---------------------------------------------------------------------------
# Module analogue of QANet DeformConv (deterministic init, no checkpoint)
# ---------------------------------------------------------------------------
class DeformConv:
    def __init__(self, in_channels, out_channels, kernel_size, stride=1,
                 padding=0, dilation=1, groups=1, deformable_groups=1,
                 bias=False, key=None):
        assert in_channels % groups == 0
        assert out_channels % groups == 0
        if key is None:
            key = jax.random.PRNGKey(0)
        self.in_channels = in_channels
        self.out_channels = out_channels
        self.kernel_size = _pair(kernel_size)
        self.stride = _pair(stride)
        self.padding = _pair(padding)
        self.dilation = _pair(dilation)
        self.groups = groups
        self.deformable_groups = deformable_groups
        kH, kW = self.kernel_size
        # kaiming_uniform_(nonlinearity='relu'): bound = sqrt(6 / fan_in)
        fan_in = (in_channels // groups) * kH * kW
        bound = math.sqrt(6.0 / fan_in)
        self.weight = jax.random.uniform(
            key, (out_channels, in_channels // groups, kH, kW),
            jnp.float32, -bound, bound)
        self.bias = jnp.zeros((out_channels,), jnp.float32) if bias else None

    def __call__(self, x, offset):
        return deform_conv_forward(
            x, offset, self.weight, self.bias, self.stride, self.padding,
            self.dilation, self.groups, self.deformable_groups)


if __name__ == "__main__":
    key = jax.random.PRNGKey(0)
    k_w, k_x, k_off = jax.random.split(key, 3)

    N, C_in, H, W = 2, 4, 16, 16
    C_out, ksize, stride, pad = 8, 3, 1, 1
    kH, kW = ksize, ksize

    conv = DeformConv(C_in, C_out, ksize, stride=stride, padding=pad,
                      dilation=1, groups=1, deformable_groups=1,
                      bias=False, key=k_w)

    x = jax.random.normal(k_x, (N, C_in, H, W), jnp.float32)
    # offset: (N, deformable_groups * 2 * kH * kW, H_out, W_out)
    H_out = (H + 2 * pad - kH) // stride + 1
    W_out = (W + 2 * pad - kW) // stride + 1
    offset = 0.5 * jax.random.normal(
        k_off, (N, 2 * kH * kW, H_out, W_out), jnp.float32)

    out = jax.block_until_ready(conv(x, offset))
    assert out.shape == (N, C_out, H_out, W_out), out.shape
    assert bool(jnp.all(jnp.isfinite(out)))

    # sanity check: zero offsets must reduce to a standard zero-padded conv.
    # reference also uses bf16 matmul inputs with f32 accumulation, so only
    # summation-order differences remain.
    out_zero = jax.block_until_ready(conv(x, jnp.zeros_like(offset)))
    ref = lax.conv_general_dilated(
        x.astype(jnp.bfloat16), conv.weight.astype(jnp.bfloat16),
        window_strides=(stride, stride),
        padding=[(pad, pad), (pad, pad)],
        dimension_numbers=("NCHW", "OIHW", "NCHW"),
        preferred_element_type=jnp.float32)
    err = float(jnp.max(jnp.abs(out_zero - ref)))
    assert err < 2e-2, err

    print("KERNEL_OK")
</pallas_src>

<mosaic_0001>
module attributes {stable_mosaic.version = 11 : i64} {
  func.func @_deform_matmul_kernel(%arg0: i32, %arg1: i32, %arg2: i32, %arg3: memref<8x36xbf16, #tpu.memory_space<vmem>>, %arg4: memref<1x36x256xbf16, #tpu.memory_space<vmem>>, %arg5: memref<8x1xf32, #tpu.memory_space<vmem>>, %arg6: memref<1x8x256xf32, #tpu.memory_space<vmem>>, %arg7: memref<8x256xf32, #tpu.memory_space<vmem>>) attributes {dimension_semantics = [#tpu.dimension_semantics<parallel>, #tpu.dimension_semantics<parallel>, #tpu.dimension_semantics<arbitrary>], iteration_bounds = array<i64: 2, 1, 1>, scalar_prefetch = 0 : i64, scratch_operands = 1 : i64, tpu.core_type = #tpu.core_type<tc>, window_params = [{pipeline_mode = #tpu.pipeline_mode<synchronous>, transform_indices = @transform_0, window_bounds = array<i64: 8, 36>}, {transform_indices = @transform_1, window_bounds = array<i64: 1, 36, 256>}, {pipeline_mode = #tpu.pipeline_mode<synchronous>, transform_indices = @transform_2, window_bounds = array<i64: 8, 1>}, {transform_indices = @transform_3, window_bounds = array<i64: 1, 8, 256>}]} {
    %c0_i32 = arith.constant 0 : i32
    %0 = arith.cmpi eq, %arg2, %c0_i32 : i32
    %1 = arith.extui %0 : i1 to i32
    %c0_i32_0 = arith.constant 0 : i32
    %2 = arith.cmpi ne, %1, %c0_i32_0 : i32
    scf.if %2 {
      %cst_11 = arith.constant 0.000000e+00 : f32
      %13 = vector.broadcast %cst_11 : f32 to vector<8x256xf32>
      %c0_12 = arith.constant 0 : index
      %c0_13 = arith.constant 0 : index
      %14 = vector.load %arg7[%c0_12, %c0_13] : memref<8x256xf32, #tpu.memory_space<vmem>>, vector<8x256xf32>
      tpu.vector_store %arg7[%c0_12, %c0_13], %13 {strides = array<i32>} : memref<8x256xf32, #tpu.memory_space<vmem>>, vector<8x256xf32>,
    } else {
    }
    %c0 = arith.constant 0 : index
    %c0_1 = arith.constant 0 : index
    %3 = vector.load %arg3[%c0, %c0_1] : memref<8x36xbf16, #tpu.memory_space<vmem>>, vector<8x36xbf16>
    %c0_2 = arith.constant 0 : index
    %c0_3 = arith.constant 0 : index
    %4 = vector.load %arg7[%c0_2, %c0_3] : memref<8x256xf32, #tpu.memory_space<vmem>>, vector<8x256xf32>
    %c0_4 = arith.constant 0 : index
    %c0_5 = arith.constant 0 : index
    %c0_6 = arith.constant 0 : index
    %5 = vector.load %arg4[%c0_4, %c0_5, %c0_6] : memref<1x36x256xbf16, #tpu.memory_space<vmem>>, vector<1x36x256xbf16>
    %6 = vector.shape_cast %5 : vector<1x36x256xbf16> to vector<36x256xbf16>
    %cst = arith.constant dense<0.000000e+00> : vector<8x256xf32>
    %7 = tpu.matmul %3, %6, %cst {dimension_numbers = #tpu.dot_dimension_numbers<[1], [0], [0], [1], [0, 0, 1, 1], [], []>} : vector<8x36xbf16>, vector<36x256xbf16>, vector<8x256xf32> -> vector<8x256xf32>
    %8 = arith.addf %4, %7 : vector<8x256xf32>
    %c0_7 = arith.constant 0 : index
    %c0_8 = arith.constant 0 : index
    %9 = vector.load %arg7[%c0_7, %c0_8] : memref<8x256xf32, #tpu.memory_space<vmem>>, vector<8x256xf32>
    tpu.vector_store %arg7[%c0_7, %c0_8], %8 {strides = array<i32>} : memref<8x256xf32, #tpu.memory_space<vmem>>, vector<8x256xf32>,
    %c0_i32_9 = arith.constant 0 : i32
    %10 = arith.cmpi eq, %arg2, %c0_i32_9 : i32
    %11 = arith.extui %10 : i1 to i32
    %c0_i32_10 = arith.constant 0 : i32
    %12 = arith.cmpi ne, %11, %c0_i32_10 : i32
    scf.if %12 {
      %c0_11 = arith.constant 0 : index
      %c0_12 = arith.constant 0 : index
      %13 = vector.load %arg7[%c0_11, %c0_12] : memref<8x256xf32, #tpu.memory_space<vmem>>, vector<8x256xf32>
      %c0_13 = arith.constant 0 : index
      %c0_14 = arith.constant 0 : index
      %14 = vector.load %arg5[%c0_13, %c0_14] : memref<8x1xf32, #tpu.memory_space<vmem>>, vector<8x1xf32>
      %15 = vector.broadcast %14 : vector<8x1xf32> to vector<8x256xf32>
      %16 = arith.addf %13, %15 : vector<8x256xf32>
      %c0_15 = arith.constant 0 : index
      %c0_16 = arith.constant 0 : index
      %c0_17 = arith.constant 0 : index
      %17 = vector.load %arg6[%c0_15, %c0_16, %c0_17] : memref<1x8x256xf32, #tpu.memory_space<vmem>>, vector<1x8x256xf32>
      %18 = vector.shape_cast %17 : vector<1x8x256xf32> to vector<8x256xf32>
      %19 = vector.shape_cast %16 : vector<8x256xf32> to vector<1x8x256xf32>
      tpu.vector_store %arg6[%c0_15, %c0_16, %c0_17], %19 {strides = array<i32>} : memref<1x8x256xf32, #tpu.memory_space<vmem>>, vector<1x8x256xf32>,
    } else {
    }
    return
  }
  func.func @transform_0(%arg0: i32, %arg1: i32, %arg2: i32) -> (i32, i32) {
    %c0_i32 = arith.constant 0 : i32
    %c0_i32_0 = arith.constant 0 : i32
    %c0_i32_1 = arith.constant 0 : i32
    return %c0_i32, %c0_i32_0 : i32, i32
  }
  func.func @transform_1(%arg0: i32, %arg1: i32, %arg2: i32) -> (i32, i32, i32) {
    %c0_i32 = arith.constant 0 : i32
    return %arg0, %arg2, %arg1 : i32, i32, i32
  }
  func.func @transform_2(%arg0: i32, %arg1: i32, %arg2: i32) -> (i32, i32) {
    %c0_i32 = arith.constant 0 : i32
    %c0_i32_0 = arith.constant 0 : i32
    %c0_i32_1 = arith.constant 0 : i32
    return %c0_i32, %c0_i32_0 : i32, i32
  }
  func.func @transform_3(%arg0: i32, %arg1: i32, %arg2: i32) -> (i32, i32, i32) {
    %c0_i32 = arith.constant 0 : i32
    %c0_i32_0 = arith.constant 0 : i32
    return %arg0, %c0_i32, %arg1 : i32, i32, i32
  }
}

</mosaic_0001>

<bundles_post_ra>
// kernel: tpu_custom_call.1
= control target key start
LH: loop header
LB: loop body
LE: loop exit
PB: predicated region body
PF: predicated region fallthrough
CT: control target
= control target key end

     0   :  { %8 = vsyncpa [#allocation4], 0  ;;  %s746_s0 = inlined_call_operand.vmem [shape: bf16[8,36], index: 0, kind: input, shape index: {}]   ;;  %s747_s1 = inlined_call_operand.vmem [shape: bf16[2,36,256], index: 1, kind: input, shape index: {}]   ;;  %s748_s2 = inlined_call_operand.vmem [shape: f32[8,1], index: 2, kind: input, shape index: {}]   ;;  %s749_s3 = inlined_call_operand.hbm [shape: f32[2,8,256], index: 3, kind: output, shape index: {}]  }
   0x1   :  { %10 = vsyncpa [#allocation4 + $0x1], 0  ;;  %s628_s12 = smov 0   ;;  %s630_s13 = smov 0  }
   0x2   :  { %s632_s14 = smov 0   ;;  %s634_s15 = smov 0  }
   0x3   :  { %s636_s16 = smov 0   ;;  %s638_s17 = smov 0  }
   0x4 LB: > { %s439_s18 = sadd.s32 4294967295, %s604_s17   ;;  %s440_s19 = sadd.s32 4294967294, %s604_s17   ;;  %s604_s17 = sphi %s638_s17, %s16_s17   ;;  %s600_s16 = sphi %s636_s16, %s756_s16   ;;  %s596_s15 = sphi %s634_s15, %s755_s15   ;;  %s592_s14 = sphi %s632_s14, %s754_s14   ;;  %s588_s13 = sphi %s630_s13, %s753_s13   ;;  %s584_s12 = sphi %s628_s12, %s752_s12  }
   0x5   : > { %s35_s20 = sadd.s32 1, %s600_s16  ;;  %s116_s21 = sadd.s32 1, %s592_s14 }
   0x6   : > { %p37_p0 = scmp.ge.s32.totalorder %s35_s20, 2  ;;  %p126_p1 = scmp.ne.s32.totalorder %s592_s14, %s588_s13 }
   0x7   : > { %p127_p2 = scmp.eq.s32.totalorder %s439_s18, 1  ;;  %p132_p3 = scmp.ne.s32.totalorder %s588_s13, %s584_s12 }
   0x8   : > { %s758_s20 = smov (%p37_p0, %s35_s20), 0  ;;  %p133_p5 = scmp.eq.s32.totalorder %s440_s19, 1 }
   0x9   : > { %p668_p4 = por %p127_p2, %p126_p1  ;;  %s111_s23 = ssub.s32 %s600_s16, %s758_s20 }
   0xa   : > { %p443_p6 = scmp.ge.s32.totalorder %s604_s17, 1  ;;  %p114_p7 = scmp.eq.s32.totalorder %s111_s23, 0 }
   0xb   : > { %p675_p8 = por %p133_p5, %p132_p3  ;;  %p176_p9 = scmp.lt.s32.totalorder %s604_s17, 3 }
   0xc   : > { %s681_s25 = scalar_select %p114_p7, %s592_s14, %s116_s21  }
   0xd   : > { %p177_p10 = pnand %p443_p6, %p176_p9 }
   0xe   : > { %p211_p11 = scmp.lt.s32.totalorder (!%p177_p10), %s596_s15, 1  ;;  %v606_v0 = vmov (!%p177_p10), 0   ;;  %v327_v1 = vld [vmem:[%s748_s2] sm:$0xff] (!%p177_p10)  ;;  %vm270_vm0 = vcmask (!%p177_p10), 1041408   ;;  %vm266_vm1 = vcmask (!%p177_p10), 293888   ;;  %s206_s8 = sand.u32 (!%p177_p10), 1, %s588_s13  }
   0xf   : > { %180 = sbr.rel (%p177_p10) target bundleno = 269 (0x10d), region = 32  ;;  %309 = vmatprep.mubr.bf16.mxu0 (!%p177_p10), %v606_v0  ;;  %517 = vset.pattern.permute.xlu0 (!%p177_p10), %v606_v0  ;;  %v233_v10 = vld [vmem:[%s746_s0] sm:$0xf] (!%p177_p10)  ;;  %s444_s9 = sshll.u32 (!%p177_p10), %s206_s8, 4 }
  0x10   : > { %330 = vperm.xlu0 (!%p177_p10), %517, %v327_v1   ;;  %s459_s10 = sshll.u32 (!%p177_p10), %s596_s15, 8  ;;  %s208_s11 = scalar_lea.vmem (!%p177_p10), [#allocation3], %s444_s9 }
  0x11   : > { %s354_s18 = sshll.u32 (!%p177_p10), %s208_s11, 4  ;;  %s699_s23 = scalar_lea.hbm (!%p177_p10), %s749_s3, %s459_s10  ;;  %s701_s18 = int_to_ptr.vmem [resolvable:$true] %s354_s18 }
  0x12   : > { %s526_s26 = scalar_lea.vmem (!%p177_p10), %s701_s18, 256  ;;  %s607_s27 = smov (!%p177_p10), [#allocation3]  }
  0x13   : > { %p527_p12 = scmp.ne.s32.totalorder (!%p177_p10), %s701_s18, %s526_s26 }
  0x15   : > { %p528_p13 = pnand (!%p177_p10), %p527_p12, %p668_p4 }
  0x16   : > { %s212_s28 = scalar_select %p211_p11, %s596_s15, 1 }
  0x17   : > { %s338_s15 = scalar_lea.sflag [#allocation4], %s206_s8  ;;  %p529_p0 = pneg %p528_p13 }
  0x18   : > { %s460_s29 = smul.u32 40, %s212_s28  ;;  %s530_s28 = sshll.u32 %s607_s27, 4  ;;  %s531_s28 = int_to_ptr.vmem [resolvable:$false] %s530_s28 }
  0x19   : > { %p533_p1 = scmp.lt.s32.totalorder %s701_s18, %s531_s28 }
  0x1a   : > { %s222_s5 = scalar_lea.vmem %s747_s1, %s460_s29  ;;  %s532_s29 = scalar_lea.vmem %s531_s28, 512 }
  0x1b   : > { %v518_v2 = vld [vmem:[%s222_s5 + $0x4] ss:$8 sps:$4 sm:$0xff]   ;;  %v520_v3 = vld [vmem:[%s222_s5] ss:$8 sps:$4 sm:$0xff]   ;;  %v521_v4 = vld [vmem:[%s222_s5 + $0x14] ss:$8 sps:$4 sm:$0xff]   ;;  %p534_p2 = scmp.lt.s32.totalorder %s532_s29, %s526_s26 }
  0x1c   : > { %277 = vmatprep.subr.bf16.mxu0 %v518_v2  ;;  %v240_v5 = vld [vmem:[%s222_s5 + $0x20] sm:$0x33]  ;;  %v523_v6 = vld [vmem:[%s222_s5 + $0x10] ss:$8 sps:$4 sm:$0xff]  }
  0x1d   : > { %278 = vmatpush1.bf16.msra.mxu0 %v520_v3  ;;  %v451_v7 = vcombine.high %v240_v5, %v240_v5  ;;  %v450_v8 = vcombine.low %v240_v5, %v240_v5  ;;  %p535_p3 = por %p534_p2, %p533_p1 }
  0x1e   : > { %279 = vmatprep.subr.bf16.mxu0 %v521_v4 }
  0x1f   : > { %v272_v9 = vsel %vm270_vm0, %v450_v8, 0  ;;  %p536_p5 = pnand %p535_p3, %p529_p0 }
  0x21   : > { %280 = vmatpush1.bf16.msra.mxu0 %v523_v6 }
  0x22   : > { %452 = vmatprep.subr.msk.bf16.mxu0 %vm270_vm0, %v451_v7 }
  0x25   : > { %282 = vmatpush1.bf16.msra.mxu0 %v272_v9 }
  0x28   : > { %453 = vmatmul.mubr.msk.bf16.vlgmr.msra.gmra.mrb[0].mxu0 %vm266_vm1, %v233_v10 }
  0x8f   : > { %v331_v11 = vpop.permute.xlu0 %330 }
  0xfb   : > { %v311_v12 = vpop.f32.mrb[0].mxu0 }
  0xfc   : > { %v333_v13 = vadd.f32 %v331_v11, %v311_v12  ;;  %v313_v14 = vpop.f32.mrb[1].mxu0 }
  0xfd   : > { %v334_v15 = vadd.f32 %v331_v11, %v313_v14  ;;  %v315_v16 = vpop.f32.mrb[2].mxu0 }
  0xfe   : > { %335 = vst [vmem:[%s208_s11] sm:$0xff] %v333_v13  ;;  %v316_v17 = vpop.f32.mrb[3].mxu0 }
  0xff   : > { %336 = vst [vmem:[%s208_s11 + $0x8] sm:$0xff] %v334_v15 }
 0x100   : > { %539 = shalt.err (!%p536_p5)
}
 0x101   : > { %s540_s30 = scalar_lea.hbm %s699_s23, 256  ;;  %s544_s6 = scalar_lea.hbm %s749_s3, 512 }
 0x102   : > { %p541_p6 = scmp.ne.s32.totalorder %s699_s23, %s540_s30  ;;  %p545_p10 = scmp.lt.u32.totalorder %s699_s23, %s749_s3 }
 0x103   : > { %p546_p11 = scmp.lt.u32.totalorder %s544_s6, %s540_s30  ;;  %p548_p13 = scmp.lt.u32.totalorder %s540_s30, %s699_s23 }
 0x104   : > { %p542_p7 = pnand %p541_p6, %p668_p4 }
 0x105   : > { %p547_p12 = por %p546_p11, %p545_p10 }
 0x106   : > { %p543_p9 = pneg %p542_p7 }
 0x107   : > { %p549_p0 = por %p548_p13, %p547_p12 }
 0x109   : > { %p550_p1 = pnand %p549_p0, %p543_p9 }
 0x10b   : > { %553 = shalt.err (!%p550_p1)
}
 0x10c   : > { %461 = dma.vmem_to_hbm [thread:$0]  (%p668_p4), %s701_s18, 256, %s699_s23, %s338_s15  }
 0x10d PF: > { %p467_p2 = scmp.ge.s32.totalorder %s604_s17, 2  ;;  %s366_s9 = sand.u32 1, %s584_s12  }
 0x10e   : > { %s367_s10 = scalar_lea.sflag [#allocation4], %s366_s9 }
 0x10f   : > { %p464_p3 = pnand %p467_p2, %p675_p8 }
 0x111   : > { %579 = dma.done.wait (!%p464_p3), %s367_s10, 256  }
 0x112   : > { %581 = vsyncadd (!%p464_p3), %s367_s10, 4294967040  ;;  %s16_s17 = sadd.s32 1, %s604_s17   ;;  %s752_s12 = smov %s588_s13 }
 0x113   : > { %p13_p5 = scmp.ge.s32.totalorder %s16_s17, 4   ;;  %s753_s13 = smov %s592_s14 }
 0x114   : > { %s754_s14 = smov %s681_s25  ;;  %s755_s15 = smov %s600_s16 }
 0x115   : > { %s756_s16 = smov %s758_s20  ;;  %15 = sbr.rel (!%p13_p5) target bundleno = 4 (0x4), region = 75 }
 0x11c   :  { %372 = vsyncpa [#allocation4], 1 }
 0x11d   :  { %374 = vsyncpa [#allocation4 + $0x1], 1 }

</bundles_post_ra>
